<compile_context>
chip_gen: v7x
topology: tpu7x:2x2x1
jax: 0.10.0
libtpu: 0.0.40
codegen_flags: <defaults>
</compile_context>

<pallas_src>
import jax
import jax.numpy as jnp
from jax.experimental import pallas as pl
from jax.experimental.pallas import tpu as pltpu


def _make_wce_kernel(n_actual: int, tm: int, c: int, tiles_per_split: int):
    """Weighted cross-entropy partial-sum kernel.

    Implements F.cross_entropy(logits, target, weight, reduction='mean'):
        loss = sum_i w[y_i] * (logsumexp(x_i) - x_i[y_i]) / sum_i w[y_i]
    Each (parallel) row-split i writes its partial numerator / denominator.
    """

    def kernel(logits_ref, tgt_ref, w_ref, num_ref, den_ref, num_acc, den_acc):
        i = pl.program_id(0)   # row split (parallel -> its own TensorCore on v7x)
        j = pl.program_id(1)   # row tile inside the split (reduction axis)

        @pl.when(j == 0)
        def _():
            num_acc[...] = jnp.zeros_like(num_acc)
            den_acc[...] = jnp.zeros_like(den_acc)

        logits = logits_ref[...].astype(jnp.float32)   # (tm, c), upcast in VMEM
        tgt = tgt_ref[...]                             # (tm, 1) int32
        w = w_ref[...].astype(jnp.float32)             # (1, c)

        # numerically-stable log-softmax pieces
        m = jnp.max(logits, axis=-1, keepdims=True)
        z = logits - m
        lse = jnp.log(jnp.sum(jnp.exp(z), axis=-1, keepdims=True))   # (tm, 1)

        # gather target logit & class weight via one-hot (no per-row gathers)
        cls_iota = jax.lax.broadcasted_iota(jnp.int32, (tm, c), 1)
        onehot = (cls_iota == tgt).astype(jnp.float32)                # (tm, c)
        z_y = jnp.sum(onehot * z, axis=-1, keepdims=True)             # (tm, 1)
        w_y = jnp.sum(onehot * w, axis=-1, keepdims=True)             # (tm, 1)
        nll = lse - z_y                                               # (tm, 1)

        # mask rows beyond the true N (ragged tail of the last block).  Use where, not a
        # multiply-mask: the un-padded tail rows contain undefined data that could be NaN.
        row = (i * tiles_per_split + j) * tm + jax.lax.broadcasted_iota(
            jnp.int32, (tm, 1), 0)
        valid = row < n_actual

        num_acc[...] += jnp.where(valid, w_y * nll, 0.0)
        den_acc[...] += jnp.where(valid, w_y, 0.0)

        @pl.when(j == pl.num_programs(1) - 1)
        def _():
            num_ref[0, 0] = jnp.sum(num_acc[...])
            den_ref[0, 0] = jnp.sum(den_acc[...])

    return kernel


def weighted_cross_entropy_pallas(logits_2d, targets_1d, class_weights, *, tm=None):
    """logits_2d: (N, C) float (native dtype), targets_1d: (N,) int, class_weights: (C,) f32.

    Returns F.cross_entropy(logits, targets, weight=class_weights, reduction='mean').
    """
    n, c = logits_2d.shape

    # Row tile: as large as practical for step-overhead amortization; multiple of 16 so the
    # same block shape is legal for f32 (8-sublane tiles) and bf16 (16-sublane tiles).
    if tm is None:
        tm = min(1024, ((n + 15) // 16) * 16)
    tm = max(16, ((tm + 15) // 16) * 16)

    total_tiles = -(-n // tm)                      # ceil(n / tm); no HBM pad copy
    # Leading "parallel" axis: 2 row splits when they divide evenly (2 TensorCores on v7x;
    # harmless sequential loop on v5e/v6e).
    n_splits = 2 if (total_tiles >= 2 and total_tiles % 2 == 0) else 1
    tiles_per_split = total_tiles // n_splits

    tgt_2d = targets_1d.reshape(n, 1).astype(jnp.int32)
    w_2d = class_weights.reshape(1, c).astype(jnp.float32)

    kernel = _make_wce_kernel(n, tm, c, tiles_per_split)

    num, den = pl.pallas_call(
        kernel,
        out_shape=(jax.ShapeDtypeStruct((n_splits, 1), jnp.float32),
                   jax.ShapeDtypeStruct((n_splits, 1), jnp.float32)),
        grid_spec=pltpu.PrefetchScalarGridSpec(
            num_scalar_prefetch=0,
            grid=(n_splits, tiles_per_split),
            in_specs=[
                pl.BlockSpec((tm, c), lambda i, j: (i * tiles_per_split + j, 0)),
                pl.BlockSpec((tm, 1), lambda i, j: (i * tiles_per_split + j, 0)),
                pl.BlockSpec((1, c), lambda i, j: (0, 0)),   # weights stay resident
            ],
            out_specs=[
                pl.BlockSpec((1, 1), lambda i, j: (i, 0), memory_space=pltpu.SMEM),
                pl.BlockSpec((1, 1), lambda i, j: (i, 0), memory_space=pltpu.SMEM),
            ],
            scratch_shapes=[
                pltpu.VMEM((tm, 1), jnp.float32),   # per-row numerator accumulator
                pltpu.VMEM((tm, 1), jnp.float32),   # per-row denominator accumulator
            ],
        ),
        compiler_params=pltpu.CompilerParams(
            dimension_semantics=("parallel", "arbitrary")),
    )(logits_2d, tgt_2d, w_2d)

    # tiny finalize in JAX: combine the per-split partial sums
    return jnp.sum(num) / jnp.sum(den)


class LabelLossPallas:
    """JAX/Pallas port of LabelLoss (DETR label classification loss)."""

    def __init__(self, eos_coeff=0.1, num_classes=81, loss_weight=1):
        self.num_classes = num_classes
        self.loss_weight = loss_weight
        ew = jnp.ones((num_classes + 1,), dtype=jnp.float32)
        self.empty_weight = ew.at[-1].set(eos_coeff)

    def __call__(self, outputs, targets, indices, **kwargs):
        src_logits = outputs["pred_logits"]                # (B, Q, C+1)
        b, q, c = src_logits.shape
        assert c == self.num_classes + 1

        # glue: scatter matched classes into a (B, Q) map filled with "no object"
        # (ragged per-image Hungarian indices -> plain-JAX, not in the kernel)
        target_classes = jnp.full((b, q), self.num_classes, dtype=jnp.int32)
        for bi, (t, (src_i, tgt_j)) in enumerate(zip(targets, indices)):
            cls = jnp.argmax(t["labels"][tgt_j], axis=-1).astype(jnp.int32)
            target_classes = target_classes.at[bi, src_i].set(cls)

        # hot path: weighted CE in Pallas; logits passed in native dtype (kernel upcasts)
        loss = weighted_cross_entropy_pallas(
            src_logits.reshape(b * q, c),
            target_classes.reshape(b * q),
            self.empty_weight,
        )
        return loss * self.loss_weight


def _reference_wce(logits_2d, targets_1d, class_weights):
    """Pure-jnp reference identical to F.cross_entropy(..., weight, reduction='mean')."""
    logits = logits_2d.astype(jnp.float32)
    logp = jax.nn.log_softmax(logits, axis=-1)
    nll = -jnp.take_along_axis(logp, targets_1d[:, None], axis=-1)[:, 0]
    w = class_weights[targets_1d]
    return jnp.sum(w * nll) / jnp.sum(w)


if __name__ == "__main__":
    key = jax.random.PRNGKey(0)
    B, Q, NUM_CLASSES = 2, 8, 81
    C = NUM_CLASSES + 1

    k1, k2, k3, k4, k5 = jax.random.split(key, 5)
    pred_logits = jax.random.normal(k1, (B, Q, C), dtype=jnp.float32)

    # targets: per-image one-hot-ish label matrices (argmax gives the class id)
    targets = [
        {"labels": jax.random.normal(k2, (3, NUM_CLASSES), dtype=jnp.float32)},
        {"labels": jax.random.normal(k3, (2, NUM_CLASSES), dtype=jnp.float32)},
    ]
    # Hungarian-matching indices: (src query indices, target indices) per image
    indices = [
        (jnp.array([1, 4, 6], dtype=jnp.int32), jnp.array([0, 1, 2], dtype=jnp.int32)),
        (jnp.array([0, 5], dtype=jnp.int32), jnp.array([1, 0], dtype=jnp.int32)),
    ]
    # src_permutation_idx (kept for API parity; the scatter above is equivalent)
    batch_idx = jnp.concatenate(
        [jnp.full(src.shape, i, dtype=jnp.int32) for i, (src, _) in enumerate(indices)])
    src_idx = jnp.concatenate([src for (src, _) in indices])

    crit = LabelLossPallas(eos_coeff=0.1, num_classes=NUM_CLASSES, loss_weight=1)
    loss = crit({"pred_logits": pred_logits}, targets, indices,
                src_permutation_idx=(batch_idx, src_idx))
    loss = jax.block_until_ready(loss)

    # check 1: module path against pure-JAX reference
    target_classes = jnp.full((B, Q), NUM_CLASSES, dtype=jnp.int32)
    for bi, (t, (si, tj)) in enumerate(zip(targets, indices)):
        target_classes = target_classes.at[bi, si].set(
            jnp.argmax(t["labels"][tj], axis=-1).astype(jnp.int32))
    ref = _reference_wce(pred_logits.reshape(B * Q, C),
                         target_classes.reshape(B * Q), crit.empty_weight)
    assert jnp.allclose(loss, ref, rtol=1e-5, atol=1e-5), (loss, ref)

    # check 2: multi-tile grid, ragged tail, 2-way parallel row split (N=200, tm=64)
    n2 = 200
    logits2 = jax.random.normal(k4, (n2, C), dtype=jnp.float32)
    tgt2 = jax.random.randint(k5, (n2,), 0, C, dtype=jnp.int32)
    loss2 = jax.block_until_ready(
        weighted_cross_entropy_pallas(logits2, tgt2, crit.empty_weight, tm=64))
    ref2 = _reference_wce(logits2, tgt2, crit.empty_weight)
    assert jnp.allclose(loss2, ref2, rtol=1e-5, atol=1e-5), (loss2, ref2)

    print("KERNEL_OK")
</pallas_src>

<mosaic_0001>
module attributes {stable_mosaic.version = 11 : i64} {
  func.func @kernel(%arg0: i32, %arg1: i32, %arg2: memref<16x82xf32, #tpu.memory_space<vmem>>, %arg3: memref<16x1xi32, #tpu.memory_space<vmem>>, %arg4: memref<1x82xf32, #tpu.memory_space<vmem>>, %arg5: memref<1x1xf32, #tpu.memory_space<smem>>, %arg6: memref<1x1xf32, #tpu.memory_space<smem>>, %arg7: memref<16x1xf32, #tpu.memory_space<vmem>>, %arg8: memref<16x1xf32, #tpu.memory_space<vmem>>) attributes {dimension_semantics = [#tpu.dimension_semantics<parallel>, #tpu.dimension_semantics<arbitrary>], iteration_bounds = array<i64: 1, 1>, scalar_prefetch = 0 : i64, scratch_operands = 2 : i64, tpu.core_type = #tpu.core_type<tc>, window_params = [{transform_indices = @transform_0, window_bounds = array<i64: 16, 82>}, {transform_indices = @transform_1, window_bounds = array<i64: 16, 1>}, {pipeline_mode = #tpu.pipeline_mode<synchronous>, transform_indices = @transform_2, window_bounds = array<i64: 1, 82>}, {transform_indices = @transform_3, window_bounds = array<i64: 1, 1>}, {transform_indices = @transform_4, window_bounds = array<i64: 1, 1>}]} {
    %c0_i32 = arith.constant 0 : i32
    %0 = arith.cmpi eq, %arg1, %c0_i32 : i32
    %1 = arith.extui %0 : i1 to i32
    %c0_i32_0 = arith.constant 0 : i32
    %2 = arith.cmpi ne, %1, %c0_i32_0 : i32
    scf.if %2 {
      %cst_22 = arith.constant 0.000000e+00 : f32
      %49 = vector.broadcast %cst_22 : f32 to vector<16x1xf32>
      %c0_23 = arith.constant 0 : index
      %c0_24 = arith.constant 0 : index
      %50 = vector.load %arg7[%c0_23, %c0_24] : memref<16x1xf32, #tpu.memory_space<vmem>>, vector<16x1xf32>
      tpu.vector_store %arg7[%c0_23, %c0_24], %49 {strides = array<i32>} : memref<16x1xf32, #tpu.memory_space<vmem>>, vector<16x1xf32>,
      %cst_25 = arith.constant 0.000000e+00 : f32
      %51 = vector.broadcast %cst_25 : f32 to vector<16x1xf32>
      %c0_26 = arith.constant 0 : index
      %c0_27 = arith.constant 0 : index
      %52 = vector.load %arg8[%c0_26, %c0_27] : memref<16x1xf32, #tpu.memory_space<vmem>>, vector<16x1xf32>
      tpu.vector_store %arg8[%c0_26, %c0_27], %51 {strides = array<i32>} : memref<16x1xf32, #tpu.memory_space<vmem>>, vector<16x1xf32>,
    } else {
    }
    %c0 = arith.constant 0 : index
    %c0_1 = arith.constant 0 : index
    %3 = vector.load %arg2[%c0, %c0_1] : memref<16x82xf32, #tpu.memory_space<vmem>>, vector<16x82xf32>
    %c0_2 = arith.constant 0 : index
    %c0_3 = arith.constant 0 : index
    %4 = vector.load %arg3[%c0_2, %c0_3] : memref<16x1xi32, #tpu.memory_space<vmem>>, vector<16x1xi32>
    %c0_4 = arith.constant 0 : index
    %c0_5 = arith.constant 0 : index
    %5 = vector.load %arg4[%c0_4, %c0_5] : memref<1x82xf32, #tpu.memory_space<vmem>>, vector<1x82xf32>
    %cst = arith.constant dense<0xFF800000> : vector<16xf32>
    %6 = vector.multi_reduction <maximumf>, %3, %cst [1] : vector<16x82xf32> to vector<16xf32>
    %7 = vector.shape_cast %6 : vector<16xf32> to vector<16x1xf32>
    %8 = vector.broadcast %7 : vector<16x1xf32> to vector<16x82xf32>
    %9 = arith.subf %3, %8 : vector<16x82xf32>
    %10 = math.exp %9 : vector<16x82xf32>
    %cst_6 = arith.constant dense<0.000000e+00> : vector<16xf32>
    %11 = vector.multi_reduction <add>, %10, %cst_6 [1] : vector<16x82xf32> to vector<16xf32>
    %12 = vector.shape_cast %11 : vector<16xf32> to vector<16x1xf32>
    %13 = math.log %12 : vector<16x1xf32>
    %14 = tpu.iota {dimensions = array<i32: 1>} : vector<16x82xi32>
    %15 = vector.broadcast %4 : vector<16x1xi32> to vector<16x82xi32>
    %16 = arith.cmpi eq, %14, %15 : vector<16x82xi32>
    %17 = arith.extui %16 : vector<16x82xi1> to vector<16x82xi32>
    %18 = arith.sitofp %17 : vector<16x82xi32> to vector<16x82xf32>
    %19 = arith.mulf %18, %9 : vector<16x82xf32>
    %cst_7 = arith.constant dense<0.000000e+00> : vector<16xf32>
    %20 = vector.multi_reduction <add>, %19, %cst_7 [1] : vector<16x82xf32> to vector<16xf32>
    %21 = vector.shape_cast %20 : vector<16xf32> to vector<16x1xf32>
    %22 = vector.broadcast %5 : vector<1x82xf32> to vector<16x82xf32>
    %23 = arith.mulf %18, %22 : vector<16x82xf32>
    %cst_8 = arith.constant dense<0.000000e+00> : vector<16xf32>
    %24 = vector.multi_reduction <add>, %23, %cst_8 [1] : vector<16x82xf32> to vector<16xf32>
    %25 = vector.shape_cast %24 : vector<16xf32> to vector<16x1xf32>
    %26 = arith.subf %13, %21 : vector<16x1xf32>
    %c1_i32 = arith.constant 1 : i32
    %27 = arith.muli %arg0, %c1_i32 : i32
    %28 = arith.addi %27, %arg1 : i32
    %c16_i32 = arith.constant 16 : i32
    %29 = arith.muli %28, %c16_i32 : i32
    %30 = tpu.iota {dimensions = array<i32: 0>} : vector<16x1xi32>
    %31 = vector.broadcast %29 : i32 to vector<16x1xi32>
    %32 = arith.addi %31, %30 : vector<16x1xi32>
    %c16_i32_9 = arith.constant 16 : i32
    %33 = vector.broadcast %c16_i32_9 : i32 to vector<16x1xi32>
    %34 = arith.cmpi slt, %32, %33 : vector<16x1xi32>
    %c0_10 = arith.constant 0 : index
    %c0_11 = arith.constant 0 : index
    %35 = vector.load %arg7[%c0_10, %c0_11] : memref<16x1xf32, #tpu.memory_space<vmem>>, vector<16x1xf32>
    %36 = arith.mulf %25, %26 : vector<16x1xf32>
    %cst_12 = arith.constant 0.000000e+00 : f32
    %37 = vector.broadcast %cst_12 : f32 to vector<16x1xf32>
    %38 = arith.select %34, %36, %37 : vector<16x1xi1>, vector<16x1xf32>
    %39 = arith.addf %35, %38 : vector<16x1xf32>
    %c0_13 = arith.constant 0 : index
    %c0_14 = arith.constant 0 : index
    %40 = vector.load %arg7[%c0_13, %c0_14] : memref<16x1xf32, #tpu.memory_space<vmem>>, vector<16x1xf32>
    tpu.vector_store %arg7[%c0_13, %c0_14], %39 {strides = array<i32>} : memref<16x1xf32, #tpu.memory_space<vmem>>, vector<16x1xf32>,
    %c0_15 = arith.constant 0 : index
    %c0_16 = arith.constant 0 : index
    %41 = vector.load %arg8[%c0_15, %c0_16] : memref<16x1xf32, #tpu.memory_space<vmem>>, vector<16x1xf32>
    %cst_17 = arith.constant 0.000000e+00 : f32
    %42 = vector.broadcast %cst_17 : f32 to vector<16x1xf32>
    %43 = arith.select %34, %25, %42 : vector<16x1xi1>, vector<16x1xf32>
    %44 = arith.addf %41, %43 : vector<16x1xf32>
    %c0_18 = arith.constant 0 : index
    %c0_19 = arith.constant 0 : index
    %45 = vector.load %arg8[%c0_18, %c0_19] : memref<16x1xf32, #tpu.memory_space<vmem>>, vector<16x1xf32>
    tpu.vector_store %arg8[%c0_18, %c0_19], %44 {strides = array<i32>} : memref<16x1xf32, #tpu.memory_space<vmem>>, vector<16x1xf32>,
    %c0_i32_20 = arith.constant 0 : i32
    %46 = arith.cmpi eq, %arg1, %c0_i32_20 : i32
    %47 = arith.extui %46 : i1 to i32
    %c0_i32_21 = arith.constant 0 : i32
    %48 = arith.cmpi ne, %47, %c0_i32_21 : i32
    scf.if %48 {
      %c0_22 = arith.constant 0 : index
      %c0_23 = arith.constant 0 : index
      %49 = vector.load %arg7[%c0_22, %c0_23] : memref<16x1xf32, #tpu.memory_space<vmem>>, vector<16x1xf32>
      %50 = vector.shape_cast %49 : vector<16x1xf32> to vector<1x16x1xf32>
      %cst_24 = arith.constant dense<0.000000e+00> : vector<1xf32>
      %51 = vector.multi_reduction <add>, %50, %cst_24 [1, 2] : vector<1x16x1xf32> to vector<1xf32>
      %52 = vector.shape_cast %51 : vector<1xf32> to vector<1x1x1xf32>
      %53 = vector.extract %52[0, 0, 0] : f32 from vector<1x1x1xf32>
      %c0_25 = arith.constant 0 : index
      %c0_26 = arith.constant 0 : index
      %54 = memref.load %arg5[%c0_25, %c0_26] : memref<1x1xf32, #tpu.memory_space<smem>>
      memref.store %53, %arg5[%c0_25, %c0_26] : memref<1x1xf32, #tpu.memory_space<smem>>
      %c0_27 = arith.constant 0 : index
      %c0_28 = arith.constant 0 : index
      %55 = vector.load %arg8[%c0_27, %c0_28] : memref<16x1xf32, #tpu.memory_space<vmem>>, vector<16x1xf32>
      %56 = vector.shape_cast %55 : vector<16x1xf32> to vector<1x16x1xf32>
      %cst_29 = arith.constant dense<0.000000e+00> : vector<1xf32>
      %57 = vector.multi_reduction <add>, %56, %cst_29 [1, 2] : vector<1x16x1xf32> to vector<1xf32>
      %58 = vector.shape_cast %57 : vector<1xf32> to vector<1x1x1xf32>
      %59 = vector.extract %58[0, 0, 0] : f32 from vector<1x1x1xf32>
      %c0_30 = arith.constant 0 : index
      %c0_31 = arith.constant 0 : index
      %60 = memref.load %arg6[%c0_30, %c0_31] : memref<1x1xf32, #tpu.memory_space<smem>>
      memref.store %59, %arg6[%c0_30, %c0_31] : memref<1x1xf32, #tpu.memory_space<smem>>
    } else {
    }
    return
  }
  func.func @transform_0(%arg0: i32, %arg1: i32) -> (i32, i32) {
    %c1_i32 = arith.constant 1 : i32
    %0 = arith.muli %arg0, %c1_i32 : i32
    %1 = arith.addi %0, %arg1 : i32
    %c0_i32 = arith.constant 0 : i32
    %c0_i32_0 = arith.constant 0 : i32
    return %1, %c0_i32 : i32, i32
  }
  func.func @transform_1(%arg0: i32, %arg1: i32) -> (i32, i32) {
    %c1_i32 = arith.constant 1 : i32
    %0 = arith.muli %arg0, %c1_i32 : i32
    %1 = arith.addi %0, %arg1 : i32
    %c0_i32 = arith.constant 0 : i32
    %c0_i32_0 = arith.constant 0 : i32
    return %1, %c0_i32 : i32, i32
  }
  func.func @transform_2(%arg0: i32, %arg1: i32) -> (i32, i32) {
    %c0_i32 = arith.constant 0 : i32
    %c0_i32_0 = arith.constant 0 : i32
    %c0_i32_1 = arith.constant 0 : i32
    return %c0_i32, %c0_i32_0 : i32, i32
  }
  func.func @transform_3(%arg0: i32, %arg1: i32) -> (i32, i32) {
    %c0_i32 = arith.constant 0 : i32
    %c0_i32_0 = arith.constant 0 : i32
    return %arg0, %c0_i32 : i32, i32
  }
  func.func @transform_4(%arg0: i32, %arg1: i32) -> (i32, i32) {
    %c0_i32 = arith.constant 0 : i32
    %c0_i32_0 = arith.constant 0 : i32
    return %arg0, %c0_i32 : i32, i32
  }
}

</mosaic_0001>

<bundles_post_ra>
// kernel: tpu_custom_call.1
= control target key start
LH: loop header
LB: loop body
LE: loop exit
PB: predicated region body
PF: predicated region fallthrough
CT: control target
= control target key end

     0   :  { %10 = vsyncpa [#allocation5], 0  ;;  %vm76_vm0 = vcmask 670720   ;;  %v283_v4 = vmov 0   ;;  %s371_s0 = inlined_call_operand.vmem [shape: f32[16,82], index: 0, kind: input, shape index: {}]   ;;  %s372_s1 = inlined_call_operand.vmem [shape: s32[16,1], index: 1, kind: input, shape index: {}]   ;;  %s373_s2 = inlined_call_operand.vmem [shape: f32[1,82], index: 2, kind: input, shape index: {}]   ;;  %s374_s3 = inlined_call_operand.hbm [shape: f32[1,1], index: 3, kind: output, shape index: {0}]   ;;  %s375_s4 = inlined_call_operand.hbm [shape: f32[1,1], index: 4, kind: output, shape index: {1}]  }
   0x1   :  { %v71_v0 = vld [vmem:[%s371_s0] sm:$0xff]  ;;  %v72_v1 = vld [vmem:[%s371_s0 + $0x8] sm:$0xff]  ;;  %249 = vset.pattern.permute.xlu1 %v283_v4  ;;  %250 = vset.pattern.permute.xlu0 %v283_v4 }
   0x2   :  { %v73_v2 = vld [vmem:[%s372_s1] sm:$0xff]  ;;  %v77_v3 = vsel %vm76_vm0, %v71_v0, -inf }
   0x3   :  { %11 = vsyncpa [#allocation7], 0  ;;  %78 = vmax.xlane.f32.xlu0 %v77_v3  ;;  %102 = vperm.xlu1 %249, %v73_v2   ;;  %v80_v5 = vsel %vm76_vm0, %v72_v1, -inf  ;;  %v74_v6 = vld [vmem:[%s372_s1 + $0x8] sm:$0xff]  ;;  %v99_v9 = vlaneseq  ;;  %v284_v17 = vmov 0.0   ;;  %vm66_vm3 = vcmask 7168  }
   0x4   :  { %v240_v27 = vld [vmem:[%s373_s2] ss:$0 sm:$0xff]  ;;  %67 = vst.msk [vmem:[#allocation2] sm:$0xff] %vm66_vm3, %v284_v17  ;;  %69 = vst.msk [vmem:[#allocation3] sm:$0xff] %vm66_vm3, %v284_v17  ;;  %s259_s25 = scalar_lea.hbm %s374_s3, 16 }
   0x5   :  { %v100_v14 = vand.u32 127, %v99_v9  ;;  %68 = vst.msk [vmem:[#allocation2 + $0x8] sm:$0xff] %vm66_vm3, %v284_v17  ;;  %70 = vst.msk [vmem:[#allocation3 + $0x8] sm:$0xff] %vm66_vm3, %v284_v17  ;;  %p260_p0 = scmp.ne.s32.totalorder %s374_s3, %s259_s25  ;;  %p263_p1 = scmp.lt.u32.totalorder %s259_s25, %s374_s3 }
   0x7   :  { %81 = vmax.xlane.f32.xlu0 %v80_v5  ;;  %105 = vperm.xlu1 %249, %v74_v6   ;;  %p265_p2 = pnand %p263_p1, %p260_p0 }
   0xb   :  { %v158_v37 = vld [vmem:[#allocation3] sm:$0xff]  ;;  %v147_v45 = vld [vmem:[#allocation2] sm:$0xff] }
   0xc   :  { %v159_v43 = vld [vmem:[#allocation3 + $0x8] sm:$0xff]  ;;  %v148_v52 = vld [vmem:[#allocation2 + $0x8] sm:$0xff] }
  0x82   :  { %v103_v12 = vpop.permute.xlu1 %102 }
  0x83   :  { %vm107_vm1 = vcmp.eq.s32.totalorder %v100_v14, %v103_v12 }
  0x84   :  { %v238_v18 = vsel %vm107_vm1, 1.0, %v284_v17 }
  0x85   :  { %v127_v29 = vmul.f32 %v240_v27, %v238_v18 }
  0x86   :  { %v106_v16 = vpop.permute.xlu1 %105 }
  0x87   :  { %vm108_vm2 = vcmp.eq.s32.totalorder %v100_v14, %v106_v16  ;;  %v129_v30 = vsel %vm76_vm0, %v127_v29, 0.0 }
  0x88   :  { %v239_v22 = vsel %vm108_vm2, 1.0, %v284_v17 }
  0x89   :  { %v128_v31 = vmul.f32 %v240_v27, %v239_v22 }
  0x8b   :  { %v132_v32 = vsel %vm76_vm0, %v128_v31, 0.0 }
  0x90   :  { %v79_v7 = vpop.xlane.xlu0 %78 }
  0x91   :  { %v83_v8 = vsub.f32 %v71_v0, %v79_v7 }
  0x93   :  { %v85_v10 = vmul.f32 1.442695, %v83_v8  ;;  %v113_v21 = vmul.f32 %v238_v18, %v83_v8 }
  0x94   :  { %v82_v11 = vpop.xlane.xlu0 %81 }
  0x95   :  { %251 = vpow2.f32 %v85_v10  ;;  %v84_v13 = vsub.f32 %v72_v1, %v82_v11  ;;  %v115_v25 = vsel %vm76_vm0, %v113_v21, 0.0 }
  0x97   :  { %v87_v15 = vmul.f32 1.442695, %v84_v13  ;;  %v114_v26 = vmul.f32 %v239_v22, %v84_v13 }
  0x99   :  { %253 = vpow2.f32 %v87_v15  ;;  %v118_v28 = vsel %vm76_vm0, %v114_v26, 0.0 }
  0x9f   :  { %v252_v19 = vpop.eup %251 }
  0xa0   :  { %v89_v20 = vsel %vm76_vm0, %v252_v19, 0.0 }
  0xa1   :  { %90 = vadd.xlane.f32.xlu0 %v89_v20 }
  0xa3   :  { %v254_v23 = vpop.eup %253 }
  0xa4   :  { %v92_v24 = vsel %vm76_vm0, %v254_v23, 0.0 }
  0xa5   :  { %93 = vadd.xlane.f32.xlu1 %v92_v24  ;;  %116 = vadd.xlane.f32.xlu0 %v115_v25 }
  0xa9   :  { %119 = vadd.xlane.f32.xlu0 %v118_v28 }
  0xad   :  { %130 = vadd.xlane.f32.xlu0 %v129_v30 }
  0xb1   :  { %133 = vadd.xlane.f32.xlu0 %v132_v32 }
 0x12e   :  { %v91_v33 = vpop.xlane.xlu0 %90 }
 0x12f   :  { %255 = vlog2.f32 %v91_v33 }
 0x132   :  { %v94_v34 = vpop.xlane.xlu1 %93  ;;  %v117_v35 = vpop.xlane.xlu0 %116 }
 0x133   :  { %257 = vlog2.f32 %v94_v34 }
 0x136   :  { %v120_v36 = vpop.xlane.xlu0 %119 }
 0x139   :  { %v256_v38 = vpop.eup %255 }
 0x13a   :  { %v96_v39 = vmul.f32 0.6931472, %v256_v38  ;;  %v131_v40 = vpop.xlane.xlu0 %130 }
 0x13b   :  { %v162_v41 = vadd.f32 %v158_v37, %v131_v40 }
 0x13c   :  { %v135_v42 = vsub.f32 %v96_v39, %v117_v35 }
 0x13d   :  { %v258_v44 = vpop.eup %257  ;;  %164 = vst.msk [vmem:[#allocation3] sm:$0xff] %vm66_vm3, %v162_v41 }
 0x13e   :  { %v98_v46 = vmul.f32 0.6931472, %v258_v44  ;;  %v149_v47 = vmul.f32 %v135_v42, %v131_v40  ;;  %v134_v48 = vpop.xlane.xlu0 %133 }
 0x13f   :  { %v163_v49 = vadd.f32 %v159_v43, %v134_v48 }
 0x140   :  { %v136_v50 = vsub.f32 %v98_v46, %v120_v36  ;;  %v153_v51 = vadd.f32 %v149_v47, %v147_v45 }
 0x141   :  { %165 = vst.msk [vmem:[#allocation3 + $0x8] sm:$0xff] %vm66_vm3, %v163_v49 }
 0x142   :  { %156 = vst.msk [vmem:[#allocation2] sm:$0xff] %vm66_vm3, %v153_v51  ;;  %v150_v53 = vmul.f32 %v136_v50, %v134_v48 }
 0x144   :  { %v154_v54 = vadd.f32 %v150_v53, %v148_v52  ;;  %v185_v61 = vld [vmem:[#allocation3] sm:$0xff] }
 0x145   :  { %v187_v63 = vsel %vm66_vm3, %v185_v61, 0.0 }
 0x146   :  { %157 = vst.msk [vmem:[#allocation2 + $0x8] sm:$0xff] %vm66_vm3, %v154_v54 }
 0x148   :  { %v186_v57 = vld [vmem:[#allocation3 + $0x8] sm:$0xff] }
 0x149   :  { %v169_v55 = vld [vmem:[#allocation2] sm:$0xff]  ;;  %v188_v62 = vsel %vm66_vm3, %v186_v57, 0.0 }
 0x14a   :  { %v171_v58 = vsel %vm66_vm3, %v169_v55, 0.0  ;;  %v189_v0 = vadd.f32 %v188_v62, %v187_v63 }
 0x14d   :  { %v170_v56 = vld [vmem:[#allocation2 + $0x8] sm:$0xff] }
 0x14e   :  { %v172_v59 = vsel %vm66_vm3, %v170_v56, 0.0 }
 0x14f   :  { %v173_v60 = vadd.f32 %v172_v59, %v171_v58 }
 0x151   :  { %174 = vadd.xlane.f32.xlu0 %v173_v60 }
 0x155   :  { %190 = vadd.xlane.f32.xlu0 %v189_v0 }
 0x1de   :  { %v175_v1 = vpop.xlane.xlu0 %174 }
 0x1df   :  { %v176_v2 = vrot.slane %v175_v1, 4 }
 0x1e1   :  { %v177_v3 = vadd.f32 %v176_v2, %v175_v1 }
 0x1e2   :  { %v191_v4 = vpop.xlane.xlu0 %190 }
 0x1e3   :  { %v178_v5 = vrot.slane %v177_v3, 2  ;;  %v192_v6 = vrot.slane %v191_v4, 4 }
 0x1e5   :  { %v193_v7 = vadd.f32 %v192_v6, %v191_v4  ;;  %v179_v8 = vadd.f32 %v178_v5, %v177_v3 }
 0x1e7   :  { %v194_v9 = vrot.slane %v193_v7, 2  ;;  %v180_v10 = vrot.slane %v179_v8, 1 }
 0x1e9   :  { %v195_v11 = vadd.f32 %v194_v9, %v193_v7  ;;  %v181_v12 = vadd.f32 %v180_v10, %v179_v8 }
 0x1eb   :  { %241 = vpush %v181_v12  ;;  %v196_v13 = vrot.slane %v195_v11, 1 }
 0x1ed   :  { %v197_v14 = vadd.f32 %v196_v13, %v195_v11 }
 0x1ef   :  { %243 = vpush %v197_v14 }
 0x21c   :  { %s242_s2 = spop %241 }
 0x21d   :  { %184 = sst [smem:[#allocation4]] %s242_s2 }
 0x21e   :  { %268 = shalt.err (!%p265_p2)
}
 0x21f   :  { %s285_s30 = smov [#allocation4]   ;;  %s269_s10 = scalar_lea.hbm %s375_s4, 16 }
 0x220   :  { %208 = dma.smem_to_hbm %s285_s30, 16, %s374_s3, [#allocation5]  }
 0x221   :  { %s244_s7 = spop %243  ;;  %p270_p3 = scmp.ne.s32.totalorder %s375_s4, %s269_s10 }
 0x222   :  { %200 = sst [smem:[#allocation6]] %s244_s7  ;;  %p273_p4 = scmp.lt.u32.totalorder %s269_s10, %s375_s4 }
 0x224   :  { %p275_p5 = pnand %p273_p4, %p270_p3 }
 0x226   :  { %278 = shalt.err (!%p275_p5)
}
 0x227   :  { %s286_s15 = smov [#allocation6]  }
 0x228   :  { %216 = dma.smem_to_hbm %s286_s15, 16, %s375_s4, [#allocation7]  }
 0x229   :  { %279 = dma.done.wait [#allocation5], 16  }
 0x22a   :  { %280 = vsyncadd [#allocation5], 4294967280 }
 0x22b   :  { %281 = dma.done.wait [#allocation7], 16  }
 0x22c   :  { %282 = vsyncadd [#allocation7], 4294967280 }
 0x22d   :  { %223 = sfence }
 0x22e   :  { %224 = vsyncpa [#allocation5], 1 }
 0x22f   :  { %225 = vsyncpa [#allocation7], 1 }

</bundles_post_ra>
